<compile_context>
chip_gen: v5e
topology: v5e:2x2
jax: 0.10.0
libtpu: 0.0.40
codegen_flags: <defaults>
</compile_context>

<pallas_src>
import math

import jax
import jax.numpy as jnp
from jax.experimental import pallas as pl
from jax.experimental.pallas import tpu as pltpu


def _offsets(widths):
    offs, off = [], 0
    for w in widths:
        offs.append(off)
        off += w
    return offs, off


def _make_copy_kernel(widths, offsets, n_inputs):
    """Copy each input block into its (static) lane slice of the output block."""

    def kernel(*refs):
        in_refs, out_ref = refs[:n_inputs], refs[n_inputs]
        for in_ref, start, w in zip(in_refs, offsets, widths):
            # With 128-aligned widths & offsets these lower to unmasked
            # full-lane vst; otherwise they are lane-masked stores, which is
            # fine for a bandwidth-bound copy.
            out_ref[..., start:start + w] = in_ref[...]

    return kernel


def _cat_dma(inputs, widths, offsets, out_shape, dtype):
    """Pure data-movement path: one HBM->HBM strided DMA per input.

    No VMEM round trip and no vector loads / masked stores; the TensorCore
    only issues DMA descriptors and waits on completion semaphores.
    """
    n = len(inputs)
    ndim = len(out_shape)

    def kernel(*refs):
        in_refs, out_ref, sem = refs[:n], refs[n], refs[n + 1]
        copies = []
        for i, (start, w) in enumerate(zip(offsets, widths)):
            idx = (slice(None),) * (ndim - 1) + (pl.ds(start, w),)
            cp = pltpu.make_async_copy(in_refs[i], out_ref.at[idx], sem.at[i])
            cp.start()
            copies.append(cp)
        for cp in copies:
            cp.wait()

    out_bytes = math.prod(out_shape) * jnp.dtype(dtype).itemsize
    return pl.pallas_call(
        kernel,
        out_shape=jax.ShapeDtypeStruct(out_shape, dtype),
        in_specs=[pl.BlockSpec(memory_space=pl.ANY)] * n,
        out_specs=pl.BlockSpec(memory_space=pl.ANY),
        scratch_shapes=[pltpu.SemaphoreType.DMA((n,))],
        cost_estimate=pl.CostEstimate(
            flops=0, transcendentals=0, bytes_accessed=2 * out_bytes),
    )(*inputs)


def cat_fuser(inputs, *, vmem_budget_bytes=8 << 20, use_dma=False,
              small_fallback_elems=0):
    """JAX/Pallas equivalent of CatFuser.forward: concat along the last dim."""
    assert len(inputs) >= 1
    x0 = inputs[0]
    dtype = x0.dtype
    lead = x0.shape[:-1]
    for x in inputs:
        assert x.shape[:-1] == lead, "all non-concat dims must match"
        assert x.dtype == dtype, "all inputs must share a dtype"

    n = len(inputs)
    widths = [int(x.shape[-1]) for x in inputs]
    offsets, out_w = _offsets(widths)
    out_shape = (*lead, out_w)
    itemsize = jnp.dtype(dtype).itemsize
    out_bytes = math.prod(out_shape) * itemsize

    # Tiny concats: a standalone pallas_call pays fixed dispatch plus
    # ~0.35 us per grid step; optionally let XLA handle such sizes.
    if small_fallback_elems and math.prod(out_shape) <= small_fallback_elems:
        return jnp.concatenate(inputs, axis=-1)

    if use_dma:
        # TODO(synk): flip this to the default once HBM->HBM sub-tile strided
        # DMA destinations are validated on hardware.
        return _cat_dma(inputs, widths, offsets, out_shape, dtype)

    kernel = _make_copy_kernel(widths, offsets, n)

    # Collapse all leading dims (free reshape) -> 2-D copy over (rows, width).
    R = math.prod(lead) if lead else 1
    flat_inputs = [x.reshape(R, w) for x, w in zip(inputs, widths)]

    # Per-grid-step live VMEM ~= 2 (double buffer) * (sum(input blocks)
    # + output block) = 4 * r_tile * out_w * itemsize.
    bytes_per_row = 4 * out_w * itemsize
    max_rows = max(1, vmem_budget_bytes // bytes_per_row)
    if max_rows >= R:
        r_tile = R
    else:
        r_tile = min(R, max(8, (max_rows // 8) * 8))  # multiple of 8, or full R
    grid_r = pl.cdiv(R, r_tile)

    footprint = 4 * r_tile * out_w * itemsize
    vmem_limit = int(min(max(footprint + (8 << 20), 16 << 20), 64 << 20))

    out_flat = pl.pallas_call(
        kernel,
        out_shape=jax.ShapeDtypeStruct((R, out_w), dtype),
        grid=(grid_r,),
        in_specs=[pl.BlockSpec((r_tile, w), lambda i: (i, 0)) for w in widths],
        out_specs=pl.BlockSpec((r_tile, out_w), lambda i: (i, 0)),
        compiler_params=pltpu.CompilerParams(
            dimension_semantics=("parallel",),
            vmem_limit_bytes=vmem_limit,
        ),
        cost_estimate=pl.CostEstimate(
            flops=0, transcendentals=0, bytes_accessed=2 * out_bytes),
    )(*flat_inputs)
    return out_flat.reshape(out_shape)


if __name__ == "__main__":
    key = jax.random.PRNGKey(0)
    k1, k2, k3 = jax.random.split(key, 3)

    # Three NCHW feature maps differing only in W (the concat axis).
    x1 = jax.random.normal(k1, (2, 4, 16, 16), dtype=jnp.float32)
    x2 = jax.random.normal(k2, (2, 4, 16, 8), dtype=jnp.float32)
    x3 = jax.random.normal(k3, (2, 4, 16, 16), dtype=jnp.float32)

    out = jax.block_until_ready(cat_fuser([x1, x2, x3]))
    ref = jnp.concatenate([x1, x2, x3], axis=-1)
    assert out.shape == (2, 4, 16, 40)
    assert jnp.array_equal(out, ref)

    # Force real row tiling (several grid steps + a remainder block) with a
    # deliberately tiny VMEM budget, to exercise the pipelined grid path.
    y1 = jax.random.normal(k1, (2, 3, 40, 24), dtype=jnp.float32)
    y2 = jax.random.normal(k2, (2, 3, 40, 8), dtype=jnp.float32)
    out2 = jax.block_until_ready(cat_fuser([y1, y2], vmem_budget_bytes=16 * 1024))
    assert jnp.array_equal(out2, jnp.concatenate([y1, y2], axis=-1))

    # bf16, lane-aligned first input.
    z1 = jax.random.normal(k1, (2, 8, 128), dtype=jnp.bfloat16)
    z2 = jax.random.normal(k2, (2, 8, 64), dtype=jnp.bfloat16)
    out3 = jax.block_until_ready(cat_fuser([z1, z2]))
    assert jnp.array_equal(out3, jnp.concatenate([z1, z2], axis=-1))

    # 1-D inputs (collapse path with R == 1).
    w1 = jax.random.normal(k1, (40,), dtype=jnp.float32)
    w2 = jax.random.normal(k2, (24,), dtype=jnp.float32)
    out4 = jax.block_until_ready(cat_fuser([w1, w2]))
    assert out4.shape == (64,)
    assert jnp.array_equal(out4, jnp.concatenate([w1, w2], axis=-1))

    print("KERNEL_OK")
</pallas_src>

<mosaic_0001>
module attributes {stable_mosaic.version = 11 : i64} {
  func.func @kernel(%arg0: i32, %arg1: memref<128x16xf32, #tpu.memory_space<vmem>>, %arg2: memref<128x8xf32, #tpu.memory_space<vmem>>, %arg3: memref<128x16xf32, #tpu.memory_space<vmem>>, %arg4: memref<128x40xf32, #tpu.memory_space<vmem>>) attributes {dimension_semantics = [#tpu.dimension_semantics<parallel>], iteration_bounds = array<i64: 1>, scalar_prefetch = 0 : i64, scratch_operands = 0 : i64, tpu.core_type = #tpu.core_type<tc>, window_params = [{transform_indices = @transform_0, window_bounds = array<i64: 128, 16>}, {transform_indices = @transform_1, window_bounds = array<i64: 128, 8>}, {transform_indices = @transform_2, window_bounds = array<i64: 128, 16>}, {transform_indices = @transform_3, window_bounds = array<i64: 128, 40>}]} {
    %c0 = arith.constant 0 : index
    %c0_0 = arith.constant 0 : index
    %0 = vector.load %arg1[%c0, %c0_0] : memref<128x16xf32, #tpu.memory_space<vmem>>, vector<128x16xf32>
    %c0_1 = arith.constant 0 : index
    %c0_2 = arith.constant 0 : index
    %1 = vector.load %arg4[%c0_1, %c0_2] : memref<128x40xf32, #tpu.memory_space<vmem>>, vector<128x16xf32>
    tpu.vector_store %arg4[%c0_1, %c0_2], %0 {strides = array<i32>} : memref<128x40xf32, #tpu.memory_space<vmem>>, vector<128x16xf32>,
    %c0_3 = arith.constant 0 : index
    %c0_4 = arith.constant 0 : index
    %2 = vector.load %arg2[%c0_3, %c0_4] : memref<128x8xf32, #tpu.memory_space<vmem>>, vector<128x8xf32>
    %c0_5 = arith.constant 0 : index
    %c16 = arith.constant 16 : index
    %3 = vector.load %arg4[%c0_5, %c16] : memref<128x40xf32, #tpu.memory_space<vmem>>, vector<128x8xf32>
    tpu.vector_store %arg4[%c0_5, %c16], %2 {strides = array<i32>} : memref<128x40xf32, #tpu.memory_space<vmem>>, vector<128x8xf32>,
    %c0_6 = arith.constant 0 : index
    %c0_7 = arith.constant 0 : index
    %4 = vector.load %arg3[%c0_6, %c0_7] : memref<128x16xf32, #tpu.memory_space<vmem>>, vector<128x16xf32>
    %c0_8 = arith.constant 0 : index
    %c24 = arith.constant 24 : index
    %5 = vector.load %arg4[%c0_8, %c24] : memref<128x40xf32, #tpu.memory_space<vmem>>, vector<128x16xf32>
    tpu.vector_store %arg4[%c0_8, %c24], %4 {strides = array<i32>} : memref<128x40xf32, #tpu.memory_space<vmem>>, vector<128x16xf32>,
    return
  }
  func.func @transform_0(%arg0: i32) -> (i32, i32) {
    %c0_i32 = arith.constant 0 : i32
    %c0_i32_0 = arith.constant 0 : i32
    return %arg0, %c0_i32 : i32, i32
  }
  func.func @transform_1(%arg0: i32) -> (i32, i32) {
    %c0_i32 = arith.constant 0 : i32
    %c0_i32_0 = arith.constant 0 : i32
    return %arg0, %c0_i32 : i32, i32
  }
  func.func @transform_2(%arg0: i32) -> (i32, i32) {
    %c0_i32 = arith.constant 0 : i32
    %c0_i32_0 = arith.constant 0 : i32
    return %arg0, %c0_i32 : i32, i32
  }
  func.func @transform_3(%arg0: i32) -> (i32, i32) {
    %c0_i32 = arith.constant 0 : i32
    %c0_i32_0 = arith.constant 0 : i32
    return %arg0, %c0_i32 : i32, i32
  }
}

</mosaic_0001>

<bundles_post_ra>
// kernel: tpu_custom_call.1
= control target key start
LH: loop header
LB: loop body
LE: loop exit
PB: predicated region body
PF: predicated region fallthrough
CT: control target
= control target key end

     0   :  { %s247_s16 = smov 16   ;;  %s248_s21 = smov 24   ;;  %vm30_vm0 = vcmask 130048   ;;  %vm127_vm1 = vcmask 195712   ;;  %vm224_vm2 = vcmask 326848   ;;  %s637_s1 = inlined_call_operand.vmem [shape: f32[128,8], index: 1, kind: input, shape index: {}]   ;;  %s638_s2 = inlined_call_operand.vmem [shape: f32[128,16], index: 2, kind: input, shape index: {}]   ;;  %s639_s0 = inlined_call_operand.vmem [shape: f32[128,16], index: 0, kind: input, shape index: {}]   ;;  %s640_s3 = inlined_call_operand.vmem [shape: f32[128,40], index: 3, kind: output, shape index: {}]  }
   0x1   :  { %v49_v0 = vld [vmem:[%s637_s1 + $0x10] sm:$0xff]  ;;  %v47_v1 = vld [vmem:[%s637_s1] sm:$0xff]  ;;  %v50_v3 = vld [vmem:[%s637_s1 + $0x18] sm:$0xff] }
   0x2   :  { %83 = vrot.lane.b32.xlu1 %v49_v0, %s247_s16  ;;  %79 = vrot.lane.b32.xlu0 %v47_v1, %s247_s16  ;;  %v51_v2 = vld [vmem:[%s637_s1 + $0x20] sm:$0xff]  ;;  %v48_v4 = vld [vmem:[%s637_s1 + $0x8] sm:$0xff] }
   0x3   :  { %87 = vrot.lane.b32.xlu2 %v51_v2, %s247_s16  ;;  %v52_v5 = vld [vmem:[%s637_s1 + $0x28] sm:$0xff]  ;;  %v54_v6 = vld [vmem:[%s637_s1 + $0x38] sm:$0xff]  ;;  %v53_v7 = vld [vmem:[%s637_s1 + $0x30] sm:$0xff] }
   0x4   :  { %v55_v8 = vld [vmem:[%s637_s1 + $0x40] sm:$0xff]  ;;  %v57_v9 = vld [vmem:[%s637_s1 + $0x50] sm:$0xff]  ;;  %v56_v10 = vld [vmem:[%s637_s1 + $0x48] sm:$0xff] }
   0x5   :  { %v58_v11 = vld [vmem:[%s637_s1 + $0x58] sm:$0xff]  ;;  %v60_v12 = vld [vmem:[%s637_s1 + $0x68] sm:$0xff]  ;;  %v59_v13 = vld [vmem:[%s637_s1 + $0x60] sm:$0xff] }
   0x6   :  { %v61_v14 = vld [vmem:[%s637_s1 + $0x70] sm:$0xff]  ;;  %v144_v15 = vld [vmem:[%s638_s2] sm:$0xff]  ;;  %v62_v16 = vld [vmem:[%s637_s1 + $0x78] sm:$0xff] }
   0x7   :  { %v145_v17 = vld [vmem:[%s638_s2 + $0x8] sm:$0xff]  ;;  %v147_v18 = vld [vmem:[%s638_s2 + $0x18] sm:$0xff]  ;;  %v146_v19 = vld [vmem:[%s638_s2 + $0x10] sm:$0xff] }
   0x8   :  { %v148_v20 = vld [vmem:[%s638_s2 + $0x20] sm:$0xff]  ;;  %v150_v21 = vld [vmem:[%s638_s2 + $0x30] sm:$0xff]  ;;  %v149_v22 = vld [vmem:[%s638_s2 + $0x28] sm:$0xff] }
   0x9   :  { %v151_v23 = vld [vmem:[%s638_s2 + $0x38] sm:$0xff]  ;;  %v153_v24 = vld [vmem:[%s638_s2 + $0x48] sm:$0xff]  ;;  %v152_v25 = vld [vmem:[%s638_s2 + $0x40] sm:$0xff] }
   0xa   :  { %85 = vrot.lane.b32.xlu1 %v50_v3, %s247_s16  ;;  %81 = vrot.lane.b32.xlu0 %v48_v4, %s247_s16  ;;  %v154_v26 = vld [vmem:[%s638_s2 + $0x50] sm:$0xff]  ;;  %v156_v27 = vld [vmem:[%s638_s2 + $0x60] sm:$0xff] }
   0xb   :  { %89 = vrot.lane.b32.xlu2 %v52_v5, %s247_s16  ;;  %v155_v28 = vld [vmem:[%s638_s2 + $0x58] sm:$0xff]  ;;  %v157_v29 = vld [vmem:[%s638_s2 + $0x68] sm:$0xff]  ;;  %v158_v31 = vld [vmem:[%s638_s2 + $0x70] sm:$0xff] }
   0xc   :  { %v159_v30 = vld [vmem:[%s638_s2 + $0x78] sm:$0xff]  ;;  %v16_v32 = vld [vmem:[%s639_s0 + $0x10] sm:$0xff]  ;;  %v14_v33 = vld [vmem:[%s639_s0] sm:$0xff] }
   0xd   :  { %33 = vst.msk [vmem:[%s640_s3 + $0x10] sm:$0xff] %vm30_vm0, %v16_v32  ;;  %v18_v34 = vld [vmem:[%s639_s0 + $0x20] sm:$0xff]  ;;  %v17_v35 = vld [vmem:[%s639_s0 + $0x18] sm:$0xff]  ;;  %v15_v36 = vld [vmem:[%s639_s0 + $0x8] sm:$0xff] }
   0xe   :  { %31 = vst.msk [vmem:[%s640_s3] sm:$0xff] %vm30_vm0, %v14_v33  ;;  %v19_v37 = vld [vmem:[%s639_s0 + $0x28] sm:$0xff]  ;;  %v21_v39 = vld [vmem:[%s639_s0 + $0x38] sm:$0xff]  ;;  %v20_v40 = vld [vmem:[%s639_s0 + $0x30] sm:$0xff] }
   0xf   :  { %35 = vst.msk [vmem:[%s640_s3 + $0x20] sm:$0xff] %vm30_vm0, %v18_v34  ;;  %v22_v41 = vld [vmem:[%s639_s0 + $0x40] sm:$0xff]  ;;  %v24_v43 = vld [vmem:[%s639_s0 + $0x50] sm:$0xff]  ;;  %v23_v44 = vld [vmem:[%s639_s0 + $0x48] sm:$0xff] }
  0x10   :  { %34 = vst.msk [vmem:[%s640_s3 + $0x18] sm:$0xff] %vm30_vm0, %v17_v35  ;;  %v25_v45 = vld [vmem:[%s639_s0 + $0x58] sm:$0xff]  ;;  %v27_v49 = vld [vmem:[%s639_s0 + $0x68] sm:$0xff]  ;;  %v26_v50 = vld [vmem:[%s639_s0 + $0x60] sm:$0xff] }
  0x11   :  { %32 = vst.msk [vmem:[%s640_s3 + $0x8] sm:$0xff] %vm30_vm0, %v15_v36  ;;  %v28_v52 = vld [vmem:[%s639_s0 + $0x70] sm:$0xff]  ;;  %v29_v55 = vld [vmem:[%s639_s0 + $0x78] sm:$0xff] }
  0x12   :  { %93 = vrot.lane.b32.xlu1 %v54_v6, %s247_s16  ;;  %91 = vrot.lane.b32.xlu0 %v53_v7, %s247_s16  ;;  %36 = vst.msk [vmem:[%s640_s3 + $0x28] sm:$0xff] %vm30_vm0, %v19_v37 }
  0x13   :  { %95 = vrot.lane.b32.xlu2 %v55_v8, %s247_s16  ;;  %38 = vst.msk [vmem:[%s640_s3 + $0x38] sm:$0xff] %vm30_vm0, %v21_v39 }
  0x14   :  { %37 = vst.msk [vmem:[%s640_s3 + $0x30] sm:$0xff] %vm30_vm0, %v20_v40 }
  0x15   :  { %39 = vst.msk [vmem:[%s640_s3 + $0x40] sm:$0xff] %vm30_vm0, %v22_v41 }
  0x16   :  { %41 = vst.msk [vmem:[%s640_s3 + $0x50] sm:$0xff] %vm30_vm0, %v24_v43 }
  0x17   :  { %40 = vst.msk [vmem:[%s640_s3 + $0x48] sm:$0xff] %vm30_vm0, %v23_v44 }
  0x18   :  { %42 = vst.msk [vmem:[%s640_s3 + $0x58] sm:$0xff] %vm30_vm0, %v25_v45 }
  0x19   :  { %44 = vst.msk [vmem:[%s640_s3 + $0x68] sm:$0xff] %vm30_vm0, %v27_v49 }
  0x1a   :  { %99 = vrot.lane.b32.xlu1 %v57_v9, %s247_s16  ;;  %97 = vrot.lane.b32.xlu0 %v56_v10, %s247_s16  ;;  %43 = vst.msk [vmem:[%s640_s3 + $0x60] sm:$0xff] %vm30_vm0, %v26_v50 }
  0x1b   :  { %101 = vrot.lane.b32.xlu2 %v58_v11, %s247_s16  ;;  %45 = vst.msk [vmem:[%s640_s3 + $0x70] sm:$0xff] %vm30_vm0, %v28_v52 }
  0x1c   :  { %46 = vst.msk [vmem:[%s640_s3 + $0x78] sm:$0xff] %vm30_vm0, %v29_v55 }
  0x22   :  { %105 = vrot.lane.b32.xlu1 %v60_v12, %s247_s16  ;;  %103 = vrot.lane.b32.xlu0 %v59_v13, %s247_s16 }
  0x23   :  { %107 = vrot.lane.b32.xlu2 %v61_v14, %s247_s16 }
  0x2a   :  { %176 = vrot.lane.b32.xlu1 %v144_v15, %s248_s21  ;;  %109 = vrot.lane.b32.xlu0 %v62_v16, %s247_s16 }
  0x2b   :  { %178 = vrot.lane.b32.xlu2 %v145_v17, %s248_s21 }
  0x32   :  { %182 = vrot.lane.b32.xlu1 %v147_v18, %s248_s21  ;;  %180 = vrot.lane.b32.xlu0 %v146_v19, %s248_s21 }
  0x33   :  { %184 = vrot.lane.b32.xlu2 %v148_v20, %s248_s21 }
  0x3a   :  { %188 = vrot.lane.b32.xlu1 %v150_v21, %s248_s21  ;;  %186 = vrot.lane.b32.xlu0 %v149_v22, %s248_s21 }
  0x3b   :  { %190 = vrot.lane.b32.xlu2 %v151_v23, %s248_s21 }
  0x42   :  { %194 = vrot.lane.b32.xlu1 %v153_v24, %s248_s21  ;;  %192 = vrot.lane.b32.xlu0 %v152_v25, %s248_s21 }
  0x43   :  { %196 = vrot.lane.b32.xlu2 %v154_v26, %s248_s21 }
  0x4a   :  { %200 = vrot.lane.b32.xlu1 %v156_v27, %s248_s21  ;;  %198 = vrot.lane.b32.xlu0 %v155_v28, %s248_s21 }
  0x4b   :  { %202 = vrot.lane.b32.xlu2 %v157_v29, %s248_s21 }
  0x52   :  { %206 = vrot.lane.b32.xlu1 %v159_v30, %s248_s21  ;;  %204 = vrot.lane.b32.xlu0 %v158_v31, %s248_s21 }
  0x5d   :  { %v88_v38 = vpop.permute.xlu2 %87 }
  0x5e   :  { %132 = vst.msk [vmem:[%s640_s3 + $0x20] sm:$0xff] %vm127_vm1, %v88_v38 }
  0x65   :  { %v90_v42 = vpop.permute.xlu2 %89 }
  0x66   :  { %133 = vst.msk [vmem:[%s640_s3 + $0x28] sm:$0xff] %vm127_vm1, %v90_v42 }
  0x6d   :  { %v96_v46 = vpop.permute.xlu2 %95 }
  0x6e   :  { %136 = vst.msk [vmem:[%s640_s3 + $0x40] sm:$0xff] %vm127_vm1, %v96_v46 }
  0x74   :  { %v84_v47 = vpop.permute.xlu1 %83  ;;  %v80_v48 = vpop.permute.xlu0 %79 }
  0x75   :  { %130 = vst.msk [vmem:[%s640_s3 + $0x10] sm:$0xff] %vm127_vm1, %v84_v47  ;;  %v102_v51 = vpop.permute.xlu2 %101 }
  0x76   :  { %128 = vst.msk [vmem:[%s640_s3] sm:$0xff] %vm127_vm1, %v80_v48 }
  0x77   :  { %139 = vst.msk [vmem:[%s640_s3 + $0x58] sm:$0xff] %vm127_vm1, %v102_v51 }
  0x7c   :  { %v86_v53 = vpop.permute.xlu1 %85  ;;  %v82_v54 = vpop.permute.xlu0 %81 }
  0x7d   :  { %131 = vst.msk [vmem:[%s640_s3 + $0x18] sm:$0xff] %vm127_vm1, %v86_v53  ;;  %v108_v56 = vpop.permute.xlu2 %107 }
  0x7e   :  { %129 = vst.msk [vmem:[%s640_s3 + $0x8] sm:$0xff] %vm127_vm1, %v82_v54 }
  0x7f   :  { %142 = vst.msk [vmem:[%s640_s3 + $0x70] sm:$0xff] %vm127_vm1, %v108_v56 }
  0x84   :  { %v94_v57 = vpop.permute.xlu1 %93  ;;  %v92_v58 = vpop.permute.xlu0 %91 }
  0x85   :  { %135 = vst.msk [vmem:[%s640_s3 + $0x38] sm:$0xff] %vm127_vm1, %v94_v57  ;;  %v179_v59 = vpop.permute.xlu2 %178 }
  0x86   :  { %134 = vst.msk [vmem:[%s640_s3 + $0x30] sm:$0xff] %vm127_vm1, %v92_v58 }
  0x87   :  { %226 = vst.msk [vmem:[%s640_s3 + $0x8] sm:$0xff] %vm224_vm2, %v179_v59 }
  0x8c   :  { %v100_v60 = vpop.permute.xlu1 %99  ;;  %v98_v61 = vpop.permute.xlu0 %97 }
  0x8d   :  { %138 = vst.msk [vmem:[%s640_s3 + $0x50] sm:$0xff] %vm127_vm1, %v100_v60  ;;  %v185_v62 = vpop.permute.xlu2 %184 }
  0x8e   :  { %137 = vst.msk [vmem:[%s640_s3 + $0x48] sm:$0xff] %vm127_vm1, %v98_v61 }
  0x8f   :  { %229 = vst.msk [vmem:[%s640_s3 + $0x20] sm:$0xff] %vm224_vm2, %v185_v62 }
  0x94   :  { %v106_v63 = vpop.permute.xlu1 %105  ;;  %v104_v0 = vpop.permute.xlu0 %103 }
  0x95   :  { %141 = vst.msk [vmem:[%s640_s3 + $0x68] sm:$0xff] %vm127_vm1, %v106_v63  ;;  %v191_v1 = vpop.permute.xlu2 %190 }
  0x96   :  { %140 = vst.msk [vmem:[%s640_s3 + $0x60] sm:$0xff] %vm127_vm1, %v104_v0 }
  0x97   :  { %232 = vst.msk [vmem:[%s640_s3 + $0x38] sm:$0xff] %vm224_vm2, %v191_v1 }
  0x9c   :  { %v177_v2 = vpop.permute.xlu1 %176  ;;  %v110_v3 = vpop.permute.xlu0 %109 }
  0x9d   :  { %225 = vst.msk [vmem:[%s640_s3] sm:$0xff] %vm224_vm2, %v177_v2  ;;  %v197_v4 = vpop.permute.xlu2 %196 }
  0x9e   :  { %143 = vst.msk [vmem:[%s640_s3 + $0x78] sm:$0xff] %vm127_vm1, %v110_v3 }
  0x9f   :  { %235 = vst.msk [vmem:[%s640_s3 + $0x50] sm:$0xff] %vm224_vm2, %v197_v4 }
  0xa4   :  { %v183_v5 = vpop.permute.xlu1 %182  ;;  %v181_v6 = vpop.permute.xlu0 %180 }
  0xa5   :  { %228 = vst.msk [vmem:[%s640_s3 + $0x18] sm:$0xff] %vm224_vm2, %v183_v5  ;;  %v203_v7 = vpop.permute.xlu2 %202 }
  0xa6   :  { %227 = vst.msk [vmem:[%s640_s3 + $0x10] sm:$0xff] %vm224_vm2, %v181_v6 }
  0xa7   :  { %238 = vst.msk [vmem:[%s640_s3 + $0x68] sm:$0xff] %vm224_vm2, %v203_v7 }
  0xac   :  { %v189_v8 = vpop.permute.xlu1 %188  ;;  %v187_v9 = vpop.permute.xlu0 %186 }
  0xad   :  { %231 = vst.msk [vmem:[%s640_s3 + $0x30] sm:$0xff] %vm224_vm2, %v189_v8 }
  0xae   :  { %230 = vst.msk [vmem:[%s640_s3 + $0x28] sm:$0xff] %vm224_vm2, %v187_v9 }
  0xb4   :  { %v195_v10 = vpop.permute.xlu1 %194  ;;  %v193_v11 = vpop.permute.xlu0 %192 }
  0xb5   :  { %234 = vst.msk [vmem:[%s640_s3 + $0x48] sm:$0xff] %vm224_vm2, %v195_v10 }
  0xb6   :  { %233 = vst.msk [vmem:[%s640_s3 + $0x40] sm:$0xff] %vm224_vm2, %v193_v11 }
  0xbc   :  { %v201_v12 = vpop.permute.xlu1 %200  ;;  %v199_v13 = vpop.permute.xlu0 %198 }
  0xbd   :  { %237 = vst.msk [vmem:[%s640_s3 + $0x60] sm:$0xff] %vm224_vm2, %v201_v12 }
  0xbe   :  { %236 = vst.msk [vmem:[%s640_s3 + $0x58] sm:$0xff] %vm224_vm2, %v199_v13 }
  0xc4   :  { %v207_v14 = vpop.permute.xlu1 %206  ;;  %v205_v15 = vpop.permute.xlu0 %204 }
  0xc5   :  { %240 = vst.msk [vmem:[%s640_s3 + $0x78] sm:$0xff] %vm224_vm2, %v207_v14 }
  0xc6   :  { %239 = vst.msk [vmem:[%s640_s3 + $0x70] sm:$0xff] %vm224_vm2, %v205_v15 }

</bundles_post_ra>
